<compile_context>
chip_gen: v7x
topology: tpu7x:2x2x1
jax: 0.10.0
libtpu: 0.0.40
codegen_flags: <defaults>
</compile_context>

<pallas_src>
import jax
import jax.numpy as jnp
from jax import lax
from jax.experimental import pallas as pl
from jax.experimental.pallas import tpu as pltpu

LANE = 128           # lane-dense last dim of the table / output
ROWS_PER_TILE = 8    # sublane tile height


def _softmax_tile_kernel(rows_ref, n_ref, o_ref):
    """One grid step = one (8, LANE) tile of pre-gathered rows.

    rows_ref : VMEM (8, LANE) f32 -- weights[batch_ids] rows for this tile
    n_ref    : VMEM (8, 1)    i32 -- valid length per row (already clamped >= 1)
    o_ref    : VMEM (8, LANE) f32 -- softmax rows (padding lanes exactly 0)
    """
    x = rows_ref[...]                                    # (8, LANE)
    n = n_ref[...]                                       # (8, 1)
    col = lax.broadcasted_iota(jnp.int32, x.shape, 1)    # (8, LANE)
    valid = col < n                                      # row-wise mask

    xm = jnp.where(valid, x, -jnp.inf)
    m = jnp.max(xm, axis=-1, keepdims=True)              # finite: n >= 1
    e = jnp.exp(xm - m)                                  # exp(-inf) == 0 on padding lanes
    s = jnp.sum(e, axis=-1, keepdims=True)
    o_ref[...] = e / s                                   # exact division (not approx)


@jax.jit
def weight_tensor_forward_batched(weights_padded, lens, batch_ids):
    """softmax(weights[batch_ids[r]]) for every r; returns (B, LANE) padded rows."""
    nb_pad, lane = weights_padded.shape
    b = batch_ids.shape[0]
    b_pad = pl.cdiv(b, ROWS_PER_TILE) * ROWS_PER_TILE

    bids = jnp.zeros((b_pad,), jnp.int32).at[:b].set(batch_ids.astype(jnp.int32))
    bids = jnp.clip(bids, 0, nb_pad - 1)                 # guard OOB ids

    # XLA gather in the wrapper -> contiguous streaming input for the pipeline.
    rows = weights_padded[bids]                          # (b_pad, LANE) f32
    n_col = jnp.maximum(lens[bids], 1).astype(jnp.int32).reshape(b_pad, 1)

    out = pl.pallas_call(
        _softmax_tile_kernel,
        out_shape=jax.ShapeDtypeStruct((b_pad, lane), jnp.float32),
        grid_spec=pl.GridSpec(
            grid=(b_pad // ROWS_PER_TILE,),
            in_specs=[
                pl.BlockSpec((ROWS_PER_TILE, lane), lambda i: (i, 0)),
                pl.BlockSpec((ROWS_PER_TILE, 1), lambda i: (i, 0)),
            ],
            out_specs=pl.BlockSpec((ROWS_PER_TILE, lane), lambda i: (i, 0)),
        ),
        compiler_params=pltpu.CompilerParams(
            dimension_semantics=("arbitrary",)),
    )(rows, n_col)
    return out[:b]


def weight_tensor_forward(weights_padded, lens, batch_id):
    """Single-id path, matching WeightTensor.forward(batch_id) (padded to LANE).

    NOTE: for one id, plain XLA (gather + masked softmax) has lower dispatch
    overhead; kept as a thin slice of the batched kernel so both paths share
    one implementation.
    """
    bid = jnp.asarray(batch_id, jnp.int32).reshape((1,))
    return weight_tensor_forward_batched(weights_padded, lens, bid)[0]


def build_weight_table(params):
    """Stack the ParameterList into a padded [R_pad, LANE] table + lengths."""
    num_slots = len(params)
    nb_pad = ((num_slots + ROWS_PER_TILE - 1) // ROWS_PER_TILE) * ROWS_PER_TILE
    table = jnp.zeros((nb_pad, LANE), jnp.float32)
    lens = jnp.zeros((nb_pad,), jnp.int32)
    for i, p in enumerate(params):
        n = p.shape[0]
        table = table.at[i, :n].set(p.astype(jnp.float32))
        lens = lens.at[i].set(n)
    return table, lens


if __name__ == "__main__":
    # WeightTensor(example_num=20, batch_size=8):
    #   weights = [Parameter(ones(8)), Parameter(ones(8)), Parameter(ones(4))]
    example_num, batch_size = 20, 8
    num_full = example_num // batch_size
    rem = example_num % batch_size
    slot_lens = [batch_size] * num_full + ([rem] if rem else [])   # [8, 8, 4]

    # Deterministic non-trivial params (torch inits to ones -> uniform softmax,
    # which would not detect a wrong-row bug).
    key = jax.random.PRNGKey(0)
    keys = jax.random.split(key, len(slot_lens))
    params = [jax.random.normal(k, (n,), jnp.float32)
              for k, n in zip(keys, slot_lens)]

    weights_padded, lens = build_weight_table(params)

    ok = True

    # Batched path: several ids (with repeats) in a single pallas_call.
    batch_ids = jnp.array([0, 1, 2, 1, 0, 2, 2, 1, 0, 1], jnp.int32)
    out = jax.block_until_ready(
        weight_tensor_forward_batched(weights_padded, lens, batch_ids))
    for r, bid in enumerate(batch_ids.tolist()):
        n = slot_lens[bid]
        got = out[r, :n]
        ref = jax.nn.softmax(params[bid], axis=0)
        if not jnp.allclose(got, ref, atol=1e-5, rtol=1e-5):
            ok = False
        if n < LANE and float(jnp.abs(out[r, n:]).max()) != 0.0:
            ok = False
        if abs(float(jnp.sum(got)) - 1.0) > 1e-4:
            ok = False

    # Single-id path (exactly WeightTensor.forward(batch_id)).
    for bid in range(len(slot_lens)):
        o = jax.block_until_ready(
            weight_tensor_forward(weights_padded, lens, bid))
        n = slot_lens[bid]
        ref = jax.nn.softmax(params[bid], axis=0)
        if not jnp.allclose(o[:n], ref, atol=1e-5, rtol=1e-5):
            ok = False
        if n < LANE and float(jnp.abs(o[n:]).max()) != 0.0:
            ok = False

    print("KERNEL_OK" if ok else "MISMATCH")
</pallas_src>

<mosaic_0001>
module attributes {stable_mosaic.version = 11 : i64} {
  func.func @_softmax_tile_kernel(%arg0: i32, %arg1: memref<8x128xf32, #tpu.memory_space<vmem>>, %arg2: memref<8x1xi32, #tpu.memory_space<vmem>>, %arg3: memref<8x128xf32, #tpu.memory_space<vmem>>) attributes {dimension_semantics = [#tpu.dimension_semantics<arbitrary>], iteration_bounds = array<i64: 2>, scalar_prefetch = 0 : i64, scratch_operands = 0 : i64, tpu.core_type = #tpu.core_type<tc>, window_params = [{transform_indices = @transform_0, window_bounds = array<i64: 8, 128>}, {transform_indices = @transform_1, window_bounds = array<i64: 8, 1>}, {transform_indices = @transform_2, window_bounds = array<i64: 8, 128>}]} {
    %c0 = arith.constant 0 : index
    %c0_0 = arith.constant 0 : index
    %0 = vector.load %arg1[%c0, %c0_0] : memref<8x128xf32, #tpu.memory_space<vmem>>, vector<8x128xf32>
    %c0_1 = arith.constant 0 : index
    %c0_2 = arith.constant 0 : index
    %1 = vector.load %arg2[%c0_1, %c0_2] : memref<8x1xi32, #tpu.memory_space<vmem>>, vector<8x1xi32>
    %2 = tpu.iota {dimensions = array<i32: 1>} : vector<8x128xi32>
    %3 = vector.broadcast %1 : vector<8x1xi32> to vector<8x128xi32>
    %4 = arith.cmpi slt, %2, %3 : vector<8x128xi32>
    %cst = arith.constant 0xFF800000 : f32
    %5 = vector.broadcast %cst : f32 to vector<8x128xf32>
    %6 = arith.select %4, %0, %5 : vector<8x128xi1>, vector<8x128xf32>
    %cst_3 = arith.constant dense<0xFF800000> : vector<8xf32>
    %7 = vector.multi_reduction <maximumf>, %6, %cst_3 [1] : vector<8x128xf32> to vector<8xf32>
    %8 = vector.shape_cast %7 : vector<8xf32> to vector<8x1xf32>
    %9 = vector.broadcast %8 : vector<8x1xf32> to vector<8x128xf32>
    %10 = arith.subf %6, %9 : vector<8x128xf32>
    %11 = math.exp %10 : vector<8x128xf32>
    %cst_4 = arith.constant dense<0.000000e+00> : vector<8xf32>
    %12 = vector.multi_reduction <add>, %11, %cst_4 [1] : vector<8x128xf32> to vector<8xf32>
    %13 = vector.shape_cast %12 : vector<8xf32> to vector<8x1xf32>
    %14 = vector.broadcast %13 : vector<8x1xf32> to vector<8x128xf32>
    %15 = arith.divf %11, %14 : vector<8x128xf32>
    %c0_5 = arith.constant 0 : index
    %c0_6 = arith.constant 0 : index
    %16 = vector.load %arg3[%c0_5, %c0_6] : memref<8x128xf32, #tpu.memory_space<vmem>>, vector<8x128xf32>
    tpu.vector_store %arg3[%c0_5, %c0_6], %15 {strides = array<i32>} : memref<8x128xf32, #tpu.memory_space<vmem>>, vector<8x128xf32>,
    return
  }
  func.func @transform_0(%arg0: i32) -> (i32, i32) {
    %c0_i32 = arith.constant 0 : i32
    %c0_i32_0 = arith.constant 0 : i32
    return %arg0, %c0_i32 : i32, i32
  }
  func.func @transform_1(%arg0: i32) -> (i32, i32) {
    %c0_i32 = arith.constant 0 : i32
    %c0_i32_0 = arith.constant 0 : i32
    return %arg0, %c0_i32 : i32, i32
  }
  func.func @transform_2(%arg0: i32) -> (i32, i32) {
    %c0_i32 = arith.constant 0 : i32
    %c0_i32_0 = arith.constant 0 : i32
    return %arg0, %c0_i32 : i32, i32
  }
}

</mosaic_0001>

<bundles_post_ra>
// kernel: weight_tensor_forward_batched.1
= control target key start
LH: loop header
LB: loop body
LE: loop exit
PB: predicated region body
PF: predicated region fallthrough
CT: control target
= control target key end

     0   :  { %7 = vsyncpa [#allocation3], 0  ;;  %s500_s0 = inlined_call_operand.vmem [shape: f32[16,128], index: 0, kind: input, shape index: {}]   ;;  %s501_s1 = inlined_call_operand.vmem [shape: s32[16,1], index: 1, kind: input, shape index: {}]   ;;  %s502_s2 = inlined_call_operand.hbm [shape: f32[16,128], index: 2, kind: output, shape index: {}]  }
   0x1   :  { %9 = vsyncpa [#allocation3 + $0x1], 0  ;;  %s397_s9 = smov 0   ;;  %s399_s10 = smov 0  }
   0x2   :  { %s401_s11 = smov 0   ;;  %s403_s12 = smov 0  }
   0x3 LB: > { %s418_s13 = sadd.s32 4294967295, %s378_s12   ;;  %s260_s14 = sadd.s32 4294967294, %s378_s12   ;;  %s378_s12 = sphi %s403_s12, %s508_s12   ;;  %s374_s11 = sphi %s401_s11, %s507_s11   ;;  %s370_s10 = sphi %s399_s10, %s506_s10   ;;  %s366_s9 = sphi %s397_s9, %s505_s9  }
   0x4   : > { %s422_s15 = sadd.s32 1, %s378_s12   ;;  %s74_s16 = sadd.s32 1, %s374_s11 }
   0x5   : > { %s71_s17 = ssub.s32 %s378_s12, %s422_s15  ;;  %p84_p0 = scmp.ne.s32.totalorder %s374_s11, %s370_s10 }
   0x6   : > { %p72_p1 = scmp.eq.s32.totalorder %s71_s17, 0  ;;  %p85_p2 = scmp.eq.s32.totalorder %s418_s13, 1 }
   0x7   : > { %p90_p3 = scmp.ne.s32.totalorder %s370_s10, %s366_s9  ;;  %p91_p4 = scmp.eq.s32.totalorder %s260_s14, 1 }
   0x8   : > { %s433_s18 = scalar_select %p72_p1, %s374_s11, %s74_s16  }
   0x9   : > { %p435_p5 = por %p85_p2, %p84_p0  ;;  %p439_p6 = por %p91_p4, %p90_p3 }
   0xa   : > { %p263_p7 = scmp.ge.s32.totalorder %s378_s12, 1  ;;  %p123_p8 = scmp.lt.s32.totalorder %s378_s12, 3 }
   0xc   : > { %p124_p9 = pnand %p263_p7, %p123_p8 }
   0xd   : > { %p148_p10 = scmp.lt.s32.totalorder (!%p124_p9), %s418_s13, 1  ;;  %v380_v0 = vmov (!%p124_p9), 0   ;;  %v158_v2 = vlaneseq (!%p124_p9)  ;;  %s145_s29 = sand.u32 (!%p124_p9), 1, %s370_s10  }
   0xe   : > { %127 = sbr.rel (%p124_p9) target bundleno = 482 (0x1e2), region = 28  ;;  %311 = vset.pattern.permute.xlu0 (!%p124_p9), %v380_v0  ;;  %s264_s30 = sshll.u32 (!%p124_p9), %s145_s29, 3 }
   0xf   : > { %v159_v3 = vand.u32 (!%p124_p9), 127, %v158_v2  ;;  %s268_s3 = sshll.u32 (!%p124_p9), %s418_s13, 7  ;;  %s147_s4 = scalar_lea.vmem (!%p124_p9), [#allocation2], %s264_s30 }
  0x10   : > { %s189_s5 = sshll.u32 (!%p124_p9), %s147_s4, 4  ;;  %s458_s8 = scalar_lea.hbm (!%p124_p9), %s502_s2, %s268_s3  ;;  %s460_s5 = int_to_ptr.vmem [resolvable:$true] %s189_s5 }
  0x11   : > { %s176_s14 = scalar_lea.sflag (!%p124_p9), [#allocation3], %s145_s29  ;;  %s316_s16 = scalar_lea.vmem (!%p124_p9), %s460_s5, 128 }
  0x12   : > { %p317_p11 = scmp.ne.s32.totalorder (!%p124_p9), %s460_s5, %s316_s16 }
  0x14   : > { %p318_p12 = pnand (!%p124_p9), %p317_p11, %p435_p5 }
  0x15   : > { %s149_s21 = scalar_select %p148_p10, %s418_s13, 1 }
  0x16   : > { %p319_p13 = pneg %p318_p12  ;;  %s381_s13 = smov [#allocation2]  }
  0x17   : > { %s265_s22 = sshll.u32 %s149_s21, 3  ;;  %s320_s17 = sshll.u32 %s381_s13, 4  ;;  %s321_s17 = int_to_ptr.vmem [resolvable:$false] %s320_s17 }
  0x18   : > { %s155_s25 = scalar_lea.vmem %s501_s1, %s265_s22  ;;  %s151_s28 = scalar_lea.vmem %s500_s0, %s265_s22 }
  0x19   : > { %v157_v1 = vld [vmem:[%s155_s25] sm:$0xff]  ;;  %s322_s21 = scalar_lea.vmem %s321_s17, 256  ;;  %p323_p0 = scmp.lt.s32.totalorder %s460_s5, %s321_s17 }
  0x1a   : > { %161 = vperm.xlu0 %311, %v157_v1   ;;  %v156_v4 = vld [vmem:[%s151_s28] sm:$0xff]  ;;  %p324_p1 = scmp.lt.s32.totalorder %s322_s21, %s316_s16 }
  0x1c   : > { %p325_p2 = por %p324_p1, %p323_p0 }
  0x1e   : > { %p326_p3 = pnand %p325_p2, %p319_p13 }
  0x99   : > { %v162_v5 = vpop.permute.xlu0 %161 }
  0x9a   : > { %vm163_vm0 = vcmp.lt.s32.totalorder %v159_v3, %v162_v5 }
  0x9b   : > { %v164_v6 = vsel %vm163_vm0, %v156_v4, -inf }
  0x9c   : > { %165 = vmax.xlane.f32.xlu0 %v164_v6 }
 0x129   : > { %v166_v7 = vpop.xlane.xlu0 %165 }
 0x12a   : > { %v167_v8 = vsub.f32 %v164_v6, %v166_v7 }
 0x12c   : > { %v168_v9 = vmul.f32 1.442695, %v167_v8 }
 0x12e   : > { %312 = vpow2.f32 %v168_v9 }
 0x138   : > { %v313_v10 = vpop.eup %312 }
 0x139   : > { %170 = vadd.xlane.f32.xlu1 %v313_v10 }
 0x1c6   : > { %v171_v11 = vpop.xlane.xlu1 %170 }
 0x1c7   : > { %314 = vrcp.f32 %v171_v11 }
 0x1d1   : > { %v315_v12 = vpop.eup %314 }
 0x1d2   : > { %v173_v13 = vmul.f32 %v315_v12, %v313_v10 }
 0x1d4   : > { %174 = vst [vmem:[%s147_s4] sm:$0xff] %v173_v13 }
 0x1d5   : > { %329 = shalt.err (!%p326_p3)
}
 0x1d6   : > { %s330_s22 = scalar_lea.hbm %s458_s8, 128  ;;  %s334_s25 = scalar_lea.hbm %s502_s2, 256 }
 0x1d7   : > { %p331_p4 = scmp.ne.s32.totalorder %s458_s8, %s330_s22  ;;  %p335_p9 = scmp.lt.u32.totalorder %s458_s8, %s502_s2 }
 0x1d8   : > { %p336_p10 = scmp.lt.u32.totalorder %s334_s25, %s330_s22  ;;  %p338_p12 = scmp.lt.u32.totalorder %s330_s22, %s458_s8 }
 0x1d9   : > { %p332_p7 = pnand %p331_p4, %p435_p5 }
 0x1da   : > { %p337_p11 = por %p336_p10, %p335_p9 }
 0x1db   : > { %p333_p8 = pneg %p332_p7 }
 0x1dc   : > { %p339_p13 = por %p338_p12, %p337_p11 }
 0x1de   : > { %p340_p0 = pnand %p339_p13, %p333_p8 }
 0x1e0   : > { %343 = shalt.err (!%p340_p0)
}
 0x1e1   : > { %271 = dma.vmem_to_hbm [thread:$0]  (%p435_p5), %s460_s5, 128, %s458_s8, %s176_s14  }
 0x1e2 PF: > { %p277_p1 = scmp.ge.s32.totalorder %s378_s12, 2  ;;  %s201_s28 = sand.u32 1, %s366_s9  }
 0x1e3   : > { %s202_s29 = scalar_lea.sflag [#allocation3], %s201_s28 }
 0x1e4   : > { %p274_p2 = pnand %p277_p1, %p439_p6 }
 0x1e6   : > { %361 = dma.done.wait (!%p274_p2), %s202_s29, 128  }
 0x1e7   : > { %363 = vsyncadd (!%p274_p2), %s202_s29, 4294967168  ;;  %p12_p3 = scmp.ge.s32.totalorder %s422_s15, 4   ;;  %s505_s9 = smov %s370_s10 }
 0x1e8   : > { %s506_s10 = smov %s374_s11  ;;  %s507_s11 = smov %s433_s18 }
 0x1e9   : > { %s508_s12 = smov %s422_s15  ;;  %14 = sbr.rel (!%p12_p3) target bundleno = 3 (0x3), region = 66 }
 0x1f0   :  { %207 = vsyncpa [#allocation3], 1 }
 0x1f1   :  { %209 = vsyncpa [#allocation3 + $0x1], 1 }

</bundles_post_ra>
